<compile_context>
chip_gen: v6e
topology: v6e:2x2x1
jax: 0.10.0
libtpu: 0.0.40
codegen_flags: <defaults>
</compile_context>

<pallas_src>
import math

import jax
import jax.numpy as jnp
from jax.experimental import pallas as pl
from jax.experimental.pallas import tpu as pltpu


def sync_tower_kernel(w_ref, out_ref):
    """One grid step: store the (pre-tiled) embedding row to every output row.

    w_ref   : (1, L) -- embedding row 0, tiled to lane width L
    out_ref : (T, L) -- lane-dense output slab tile
    """
    out_ref[...] = jnp.broadcast_to(w_ref[...], out_ref.shape)


def _pick_row_tile(total_rows, lane_width, itemsize, target_bytes=4 << 20):
    """Rows per output block.

    Constraints:
      * multiple of the sublane-packing factor for the dtype
        (8 for 4-byte, 16 for 2-byte, 32 for 1-byte elements),
      * block bytes <= target_bytes (double-buffered it stays inside every
        generation's default scoped-VMEM limit),
      * at least 2 blocks in the grid when the slab allows it (v7x 2-TC
        split), preferring an even block count and an exact divisor of
        total_rows (no masked edge block).
    """
    itemsize = max(int(itemsize), 1)
    sub = max(8, 32 // itemsize)
    if total_rows < 2 * sub:
        return total_rows  # single full-extent block (always layout legal)

    cap = max(sub, (target_bytes // (lane_width * itemsize)) // sub * sub)
    # Guarantee >= 2 grid steps so a 2-TensorCore chip splits the work.
    cap = min(cap, max(sub, (total_rows // 2) // sub * sub))

    # Prefer exact divisors giving an even number of blocks, then any exact
    # divisor, then accept a ragged tail (Pallas masks the edge block).
    for want_even in (True, False):
        t = cap
        while t >= sub:
            if total_rows % t == 0 and (not want_even or (total_rows // t) % 2 == 0):
                return t
            t -= sub
    return cap


def sync_tower_forward(input_ids, embed_weight, *, force_pallas=False,
                       min_elements_for_pallas=1 << 16):
    """input_ids: (B, S) int; embed_weight: (1, H) -> (B, S, H) in weight dtype."""
    B, S = input_ids.shape
    H = embed_weight.shape[1]
    out_dtype = embed_weight.dtype               # preserve module dtype (no upcast)
    itemsize = jnp.dtype(out_dtype).itemsize
    N = B * S
    total = N * H

    row = embed_weight[0]                        # (H,)

    # Tiny outputs: a pallas_call's launch/pipeline cost dwarfs the work.
    if not force_pallas and total < min_elements_for_pallas:
        return jnp.broadcast_to(row[None, None, :], (B, S, H))

    # Lane-dense slab: lane width L multiple of 128 AND of H, dividing total.
    lane = H if H % 128 == 0 else (H * 128) // math.gcd(H, 128)
    if total % lane != 0:
        # TODO(synk): no clean lane-dense factorization for this (N, H); fall
        # back to the identical-semantics XLA broadcast instead of emitting a
        # masked-partial-store kernel.
        return jnp.broadcast_to(row[None, None, :], (B, S, H))

    R = total // lane                            # slab rows
    T = _pick_row_tile(R, lane, itemsize)        # rows per grid step
    num_tiles = pl.cdiv(R, T)

    # Pre-tile the single row across the lane width once (tiny host-side op),
    # so the kernel body is a single sublane broadcast + unmasked lane-dense store.
    w_tiled = jnp.tile(row, lane // H).reshape(1, lane)

    out_slab = pl.pallas_call(
        sync_tower_kernel,
        out_shape=jax.ShapeDtypeStruct((R, lane), out_dtype),
        grid_spec=pltpu.PrefetchScalarGridSpec(
            num_scalar_prefetch=0,
            grid=(num_tiles,),
            in_specs=[
                pl.BlockSpec((1, lane), lambda i: (0, 0)),   # embedding row (tiled)
            ],
            out_specs=pl.BlockSpec((T, lane), lambda i: (i, 0)),
        ),
        compiler_params=pltpu.CompilerParams(
            dimension_semantics=("parallel",)),
        cost_estimate=pl.CostEstimate(
            flops=0,
            transcendentals=0,
            bytes_accessed=total * itemsize + num_tiles * lane * itemsize),
    )(w_tiled)

    return out_slab.reshape(B, S, H)


if __name__ == "__main__":
    key = jax.random.PRNGKey(0)
    k_ids, k_w, k_ids2, k_w2, k_ids3, k_w3 = jax.random.split(key, 6)

    # --- primary small-shape test (forces the Pallas path) ---
    B, S, H = 2, 8, 32
    input_ids = jax.random.randint(k_ids, (B, S), minval=0, maxval=100,
                                   dtype=jnp.int32)
    embed_weight = jax.random.normal(k_w, (1, H), dtype=jnp.float32)

    out = sync_tower_forward(input_ids, embed_weight, force_pallas=True)
    out = jax.block_until_ready(out)

    ref = jnp.broadcast_to(embed_weight[0][None, None, :], (B, S, H))
    assert out.shape == (B, S, H)
    assert out.dtype == jnp.float32
    assert jnp.allclose(out, ref)

    # --- larger shape exercising the tiled, lane-dense (H % 128 == 0), 2+ block grid ---
    B2, S2, H2 = 4, 128, 256
    input_ids2 = jax.random.randint(k_ids2, (B2, S2), minval=0, maxval=100,
                                    dtype=jnp.int32)
    embed_weight2 = jax.random.normal(k_w2, (1, H2), dtype=jnp.float32)

    out2 = sync_tower_forward(input_ids2, embed_weight2)
    out2 = jax.block_until_ready(out2)

    ref2 = jnp.broadcast_to(embed_weight2[0][None, None, :], (B2, S2, H2))
    assert out2.shape == (B2, S2, H2)
    assert out2.dtype == jnp.float32
    assert jnp.allclose(out2, ref2)

    # --- reduced-precision table: output stays bf16 (halves HBM write traffic) ---
    B3, S3, H3 = 2, 64, 128
    input_ids3 = jax.random.randint(k_ids3, (B3, S3), minval=0, maxval=100,
                                    dtype=jnp.int32)
    embed_weight3 = jax.random.normal(k_w3, (1, H3), dtype=jnp.float32).astype(jnp.bfloat16)

    out3 = sync_tower_forward(input_ids3, embed_weight3, force_pallas=True)
    out3 = jax.block_until_ready(out3)

    ref3 = jnp.broadcast_to(embed_weight3[0][None, None, :], (B3, S3, H3))
    assert out3.shape == (B3, S3, H3)
    assert out3.dtype == jnp.bfloat16
    assert jnp.array_equal(out3, ref3)

    print("KERNEL_OK")
</pallas_src>

<mosaic_0001>
module attributes {stable_mosaic.version = 11 : i64} {
  func.func @sync_tower_kernel(%arg0: i32, %arg1: memref<1x128xf32, #tpu.memory_space<vmem>>, %arg2: memref<4x128xf32, #tpu.memory_space<vmem>>) attributes {dimension_semantics = [#tpu.dimension_semantics<parallel>], iteration_bounds = array<i64: 1>, scalar_prefetch = 0 : i64, scratch_operands = 0 : i64, tpu.core_type = #tpu.core_type<tc>, window_params = [{pipeline_mode = #tpu.pipeline_mode<synchronous>, transform_indices = @transform_0, window_bounds = array<i64: 1, 128>}, {transform_indices = @transform_1, window_bounds = array<i64: 4, 128>}]} {
    %c0 = arith.constant 0 : index
    %c0_0 = arith.constant 0 : index
    %0 = vector.load %arg1[%c0, %c0_0] : memref<1x128xf32, #tpu.memory_space<vmem>>, vector<1x128xf32>
    %1 = vector.shape_cast %0 : vector<1x128xf32> to vector<1x128xf32>
    %2 = vector.broadcast %1 : vector<1x128xf32> to vector<4x128xf32>
    %c0_1 = arith.constant 0 : index
    %c0_2 = arith.constant 0 : index
    %3 = vector.load %arg2[%c0_1, %c0_2] : memref<4x128xf32, #tpu.memory_space<vmem>>, vector<4x128xf32>
    tpu.vector_store %arg2[%c0_1, %c0_2], %2 {strides = array<i32>} : memref<4x128xf32, #tpu.memory_space<vmem>>, vector<4x128xf32>,
    return
  }
  func.func @transform_0(%arg0: i32) -> (i32, i32) {
    %c0_i32 = arith.constant 0 : i32
    %c0_i32_0 = arith.constant 0 : i32
    %c0_i32_1 = arith.constant 0 : i32
    return %c0_i32, %c0_i32_0 : i32, i32
  }
  func.func @transform_1(%arg0: i32) -> (i32, i32) {
    %c0_i32 = arith.constant 0 : i32
    %c0_i32_0 = arith.constant 0 : i32
    return %arg0, %c0_i32 : i32, i32
  }
}

</mosaic_0001>

<bundles_post_ra>
// kernel: tpu_custom_call.1
= control target key start
LH: loop header
LB: loop body
LE: loop exit
PB: predicated region body
PF: predicated region fallthrough
CT: control target
= control target key end

     0   :  { %6 = vsyncpa [#allocation3], 0  ;;  %s109_s0 = inlined_call_operand.hbm [shape: f32[1,128], index: 0, kind: input, shape index: {}]   ;;  %s110_s1 = inlined_call_operand.hbm [shape: f32[4,128], index: 1, kind: output, shape index: {}]  }
   0x1   :  { %7 = vsyncpa [#allocation4], 0  ;;  %s91_s6 = smov [#allocation2]  }
   0x2   :  { %s14_s7 = sshll.u32 %s91_s6, 4  ;;  %s15_s7 = int_to_ptr.vmem [resolvable:$true] %s14_s7 }
   0x3   :  { %s55_s8 = scalar_lea.vmem %s15_s7, 16  ;;  %s59_s9 = scalar_lea.vmem %s15_s7, 32 }
   0x4   :  { %p56_p0 = scmp.ne.s32.totalorder %s15_s7, %s55_s8  ;;  %p60_p1 = scmp.lt.s32.totalorder %s15_s7, %s15_s7 }
   0x5   :  { %p61_p2 = scmp.lt.s32.totalorder %s59_s9, %s55_s8 }
   0x7   :  { %p62_p3 = por %p61_p2, %p60_p1 }
   0x9   :  { %p63_p4 = pnand %p62_p3, %p56_p0 }
   0xb   :  { %66 = shalt.err (!%p63_p4)
}
   0xc   :  { %17 = dma.hbm_to_vmem [thread:$0]  %s109_s0, 16, %s15_s7, [#allocation3]  }
   0xd   :  { %87 = dma.done.wait [#allocation3], 16  }
   0xe   :  { %88 = vsyncadd [#allocation3], 4294967280  ;;  %s92_s12 = smov [#allocation5]   ;;  %v44_v0 = vld [vmem:[#allocation2] ss:$0 sm:$0xff] }
   0xf   :  { %s35_s13 = sshll.u32 %s92_s12, 4  ;;  %28 = vst [vmem:[#allocation5] sm:$0xf] %v44_v0  ;;  %s36_s13 = int_to_ptr.vmem [resolvable:$true] %s35_s13 }
  0x10   :  { %s67_s14 = scalar_lea.vmem %s36_s13, 64  ;;  %p72_p6 = scmp.lt.s32.totalorder %s36_s13, %s36_s13 }
  0x11   :  { %p68_p5 = scmp.ne.s32.totalorder %s36_s13, %s67_s14  ;;  %p73_p7 = scmp.lt.s32.totalorder %s67_s14, %s67_s14 }
  0x13   :  { %p74_p8 = por %p73_p7, %p72_p6 }
  0x15   :  { %p75_p9 = pnand %p74_p8, %p68_p5 }
  0x17   :  { %78 = shalt.err (!%p75_p9)
}
  0x18   :  { %38 = dma.vmem_to_hbm [thread:$0]  %s36_s13, 64, %s110_s1, [#allocation4]  }
  0x19   :  { %89 = dma.done.wait [#allocation4], 64  }
  0x1a   :  { %90 = vsyncadd [#allocation4], 4294967232 }
  0x1b   :  { %42 = vsyncpa [#allocation3], 1 }
  0x1c   :  { %43 = vsyncpa [#allocation4], 1 }

</bundles_post_ra>
